<compile_context>
chip_gen: v6e
topology: v6e:2x2x1
jax: 0.10.0
libtpu: 0.0.40
codegen_flags: <defaults>
</compile_context>

<pallas_src>
import functools

import jax
import jax.numpy as jnp
from jax import lax
from jax.experimental import pallas as pl
from jax.experimental.pallas import tpu as pltpu


# ---------------------------------------------------------------------------
# Fused kernel: grid = (graph groups, destination-column tiles)
# ---------------------------------------------------------------------------
def _node_info_score_kernel(adj_ref, feat_ref, srcn_ref, dstn_ref, diag_ref,
                            out_ref):
    """Block shapes (leading dim = G graphs packed per grid step):

      adj_ref  : (G, N, TN)   ORIGINAL edge weights (mxu dtype), A[u, v] = w(u->v)
      feat_ref : (G, F, N)    node features, feature-major (nodes on lanes), f32
      srcn_ref : (G, 1, N)    per-source-node normalisation, f32
      dstn_ref : (G, 1, TN)   per-destination-node normalisation (this tile), f32
      diag_ref : (G, 1, TN)   diag(A) for this column tile (self-loop weights), f32
      out_ref  : (1, 1, G*TN) packed lane-dense score row, f32
    """
    G, _, TN = adj_ref.shape
    N = feat_ref.shape[2]
    if TN == N:                                    # single column tile
        col0 = 0
    else:
        col0 = pl.multiple_of(pl.program_id(1) * TN, TN)

    for g in range(G):                             # static unroll, G is small
        x = feat_ref[g]                            # (F, N)  f32
        h = x * srcn_ref[g]                        # source-scaled features, f32
        # message passing u_mul_e -> sum at dst, f32 accumulation on the MXU:
        #   agg[f, v] = sum_u h[u, f] * A[u, col0 + v]
        agg = jnp.dot(h.astype(adj_ref.dtype), adj_ref[g],
                      preferred_element_type=jnp.float32)          # (F, TN)
        # dgl.remove_self_loop: subtract the (source-scaled) u == v contribution.
        if TN == N:
            x_c, h_c = x, h
        else:
            x_c = feat_ref[g, :, pl.ds(col0, TN)]                   # (F, TN)
            h_c = x_c * srcn_ref[g, :, pl.ds(col0, TN)]
        agg = agg - h_c * diag_ref[g]
        # destination scaling + |feat - agg| + feature (sublane) reduction
        res = x_c - agg * dstn_ref[g]                               # (F, TN)
        out_ref[0, :, g * TN:(g + 1) * TN] = jnp.sum(
            jnp.abs(res), axis=0, keepdims=True)                    # (1, TN)


# ---------------------------------------------------------------------------
# Tiling policy
# ---------------------------------------------------------------------------
def _choose_tiles(B, N, mxu_itemsize, block_n):
    """Pick (G = graphs per grid step, TN = destination-column tile width)."""
    if block_n is not None:
        assert N % block_n == 0, "block_n must divide N"
        return 1, block_n
    # Pack small graphs so the packed score row is lane-dense and the per-grid-step
    # overhead is amortised over G graphs.
    G = 1
    if N < 128:
        target = max(1, 512 // N)
        G = max(g for g in range(1, B + 1) if B % g == 0 and g <= target)
    # Destination-column tile sized from a VMEM budget for the double-buffered
    # adjacency block (the dominant allocation); 128-aligned for full MXU tiles.
    adj_budget = 16 * 1024 * 1024
    tn_cap = max(128, adj_budget // (2 * G * N * mxu_itemsize))
    if N <= tn_cap:
        return G, N
    t = (tn_cap // 128) * 128
    while t >= 128:
        if N % t == 0:
            return G, t
        t -= 128
    return G, N            # fallback: no 128-aligned divisor of N


# ---------------------------------------------------------------------------
# Wrapper: degree norms + diag extraction in XLA, fused score kernel in Pallas
# ---------------------------------------------------------------------------
@functools.partial(jax.jit, static_argnames=("sym_norm", "mxu_dtype", "block_n"))
def node_info_score(adj, edge_mask, feat, sym_norm=True,
                    mxu_dtype=jnp.bfloat16, block_n=None):
    """Batched NodeInfoScoreLayer.forward.

    adj       : (B, N, N) dense edge weights (e_feat); adj[b, u, v] = w(u->v).
                May include self-loop weights (removed inside the kernel).
    edge_mask : (B, N, N) 0/1 edge existence of the ORIGINAL graph (defines degrees).
    feat      : (B, N, F) node features.
    returns   : (B, N)    score[b, v] = sum_f |feat - dst_norm * msg_sum|.
    """
    B, N, F = feat.shape

    # Degrees of the ORIGINAL graph (before remove_self_loop), clamp(min=1) — as in torch.
    out_deg = jnp.maximum(jnp.sum(edge_mask, axis=2), 1.0)          # (B, N)
    in_deg = jnp.maximum(jnp.sum(edge_mask, axis=1), 1.0)           # (B, N)
    if sym_norm:
        src_row = lax.rsqrt(out_deg)[:, None, :]                    # (B, 1, N)
        dst_row = lax.rsqrt(in_deg)[:, None, :]                     # (B, 1, N)
    else:
        src_row = jnp.ones((B, 1, N), jnp.float32)
        dst_row = (1.0 / in_deg)[:, None, :]

    # Self-loop weights: tiny (B, N) diagonal gather; the full (B, N, N) adjacency
    # is NOT rewritten — the kernel subtracts the diagonal term after the dot.
    diag_row = jnp.diagonal(adj, axis1=1, axis2=2).astype(jnp.float32)[:, None, :]

    # MXU operand dtype for the dominant (B, N, N) tensor (bf16 halves its DMA bytes).
    adj_mxu = adj if adj.dtype == mxu_dtype else adj.astype(mxu_dtype)
    feat_t = jnp.swapaxes(feat, -1, -2).astype(jnp.float32)         # (B, F, N)
    src_row = src_row.astype(jnp.float32)
    dst_row = dst_row.astype(jnp.float32)

    item = jnp.dtype(mxu_dtype).itemsize
    G, TN = _choose_tiles(B, N, item, block_n)
    grid = (B // G, N // TN)

    block_bytes = (G * N * TN * item         # adjacency tile
                   + G * F * N * 4           # features
                   + G * N * 4               # src norm
                   + 2 * G * TN * 4          # dst norm + diag
                   + G * TN * 4)             # output row
    vmem_limit = int(min(64 * 1024 * 1024, max(32 * 1024 * 1024, 4 * block_bytes)))

    cost = pl.CostEstimate(
        flops=2 * B * F * N * N + 8 * B * F * N,
        transcendentals=0,
        bytes_accessed=B * N * N * item + B * F * N * 4 + 4 * B * N * 4)

    out = pl.pallas_call(
        _node_info_score_kernel,
        out_shape=jax.ShapeDtypeStruct((B // G, 1, G * N), jnp.float32),
        grid=grid,
        in_specs=[
            pl.BlockSpec((G, N, TN), lambda bg, j: (bg, 0, j)),     # adjacency tile
            pl.BlockSpec((G, F, N), lambda bg, j: (bg, 0, 0)),      # features (j-invariant)
            pl.BlockSpec((G, 1, N), lambda bg, j: (bg, 0, 0)),      # src norm (j-invariant)
            pl.BlockSpec((G, 1, TN), lambda bg, j: (bg, 0, j)),     # dst norm (this tile)
            pl.BlockSpec((G, 1, TN), lambda bg, j: (bg, 0, j)),     # diag(A)  (this tile)
        ],
        out_specs=pl.BlockSpec((1, 1, G * TN), lambda bg, j: (bg, 0, j)),
        compiler_params=pltpu.CompilerParams(
            dimension_semantics=("parallel", "parallel"),
            vmem_limit_bytes=vmem_limit),
        cost_estimate=cost,
    )(adj_mxu, feat_t, src_row, dst_row, diag_row)

    # (B//G, 1, G*N) -> (B, N): graph (bg*G + g) occupies columns [g*N, (g+1)*N).
    return out.reshape(B, N)


# ---------------------------------------------------------------------------
# Pure-JAX reference (mirrors the torch module exactly, f32 everywhere)
# ---------------------------------------------------------------------------
def node_info_score_ref(adj, edge_mask, feat, sym_norm=True):
    out_deg = jnp.maximum(jnp.sum(edge_mask, axis=2), 1.0)
    in_deg = jnp.maximum(jnp.sum(edge_mask, axis=1), 1.0)
    eye = jnp.eye(adj.shape[-1], dtype=adj.dtype)
    adj_ns = adj * (1.0 - eye)                                      # remove_self_loop
    if sym_norm:
        src = lax.rsqrt(out_deg)[..., None]                         # (B, N, 1)
        dst = lax.rsqrt(in_deg)[..., None]
        h = feat * src
        agg = jnp.einsum("buv,buf->bvf", adj_ns, h,
                         precision=lax.Precision.HIGHEST)
        res = feat - agg * dst
    else:
        dst = (1.0 / in_deg)[..., None]
        agg = jnp.einsum("buv,buf->bvf", adj_ns, feat,
                         precision=lax.Precision.HIGHEST)
        res = feat - dst * agg
    return jnp.sum(jnp.abs(res), axis=-1)


if __name__ == "__main__":
    root = jax.random.PRNGKey(0)
    key_small, key_tiled = jax.random.split(root, 2)

    def make_inputs(key, B, N, F):
        k_feat, k_mask, k_w = jax.random.split(key, 3)
        feat = jax.random.normal(k_feat, (B, N, F), dtype=jnp.float32)
        # random directed graphs (~30% density); self-loops allowed — degrees use
        # the original graph, aggregation removes self-loops (torch semantics).
        edge_mask = (jax.random.uniform(k_mask, (B, N, N)) < 0.3).astype(jnp.float32)
        weights = jax.random.uniform(k_w, (B, N, N), minval=0.5, maxval=1.5,
                                     dtype=jnp.float32)
        return weights * edge_mask, edge_mask, feat

    # --- small-graph regime: G graphs packed per grid step ---------------------
    adj, edge_mask, feat = make_inputs(key_small, 8, 16, 32)
    for sym in (True, False):
        ref = node_info_score_ref(adj, edge_mask, feat, sym_norm=sym)
        # bf16 MXU operands (default: halves adjacency DMA bytes) — loose tolerance.
        out = node_info_score(adj, edge_mask, feat, sym_norm=sym)
        jax.block_until_ready(out)
        assert out.shape == ref.shape
        assert bool(jnp.allclose(out, ref, rtol=2e-2, atol=2e-1)), f"bf16 sym={sym}"
        # f32 MXU operands — tighter semantics check.
        out32 = node_info_score(adj, edge_mask, feat, sym_norm=sym,
                                mxu_dtype=jnp.float32)
        jax.block_until_ready(out32)
        assert bool(jnp.allclose(out32, ref, rtol=1e-2, atol=5e-2)), f"f32 sym={sym}"

    # --- destination-column-tiled regime (forced TN=128 at a modest size) ------
    adj2, edge_mask2, feat2 = make_inputs(key_tiled, 2, 256, 16)
    for sym in (True, False):
        ref2 = node_info_score_ref(adj2, edge_mask2, feat2, sym_norm=sym)
        out2 = node_info_score(adj2, edge_mask2, feat2, sym_norm=sym, block_n=128)
        jax.block_until_ready(out2)
        assert out2.shape == ref2.shape
        assert bool(jnp.allclose(out2, ref2, rtol=2e-2, atol=2e-1)), f"tiled sym={sym}"

    print("KERNEL_OK")
</pallas_src>

<mosaic_0001>
module attributes {stable_mosaic.version = 11 : i64} {
  func.func @_node_info_score_kernel(%arg0: i32, %arg1: i32, %arg2: memref<8x16x16xbf16, #tpu.memory_space<vmem>>, %arg3: memref<8x32x16xf32, #tpu.memory_space<vmem>>, %arg4: memref<8x1x16xf32, #tpu.memory_space<vmem>>, %arg5: memref<8x1x16xf32, #tpu.memory_space<vmem>>, %arg6: memref<8x1x16xf32, #tpu.memory_space<vmem>>, %arg7: memref<1x1x128xf32, #tpu.memory_space<vmem>>) attributes {dimension_semantics = [#tpu.dimension_semantics<parallel>, #tpu.dimension_semantics<parallel>], iteration_bounds = array<i64: 1, 1>, scalar_prefetch = 0 : i64, scratch_operands = 0 : i64, tpu.core_type = #tpu.core_type<tc>, window_params = [{transform_indices = @transform_0, window_bounds = array<i64: 8, 16, 16>}, {transform_indices = @transform_1, window_bounds = array<i64: 8, 32, 16>}, {transform_indices = @transform_2, window_bounds = array<i64: 8, 1, 16>}, {transform_indices = @transform_3, window_bounds = array<i64: 8, 1, 16>}, {transform_indices = @transform_4, window_bounds = array<i64: 8, 1, 16>}, {transform_indices = @transform_5, window_bounds = array<i64: 1, 1, 128>}]} {
    %c0 = arith.constant 0 : index
    %c0_0 = arith.constant 0 : index
    %c0_1 = arith.constant 0 : index
    %0 = vector.load %arg3[%c0, %c0_0, %c0_1] : memref<8x32x16xf32, #tpu.memory_space<vmem>>, vector<1x32x16xf32>
    %1 = vector.shape_cast %0 : vector<1x32x16xf32> to vector<32x16xf32>
    %c0_2 = arith.constant 0 : index
    %c0_3 = arith.constant 0 : index
    %c0_4 = arith.constant 0 : index
    %2 = vector.load %arg4[%c0_2, %c0_3, %c0_4] : memref<8x1x16xf32, #tpu.memory_space<vmem>>, vector<1x1x16xf32>
    %3 = vector.shape_cast %2 : vector<1x1x16xf32> to vector<1x16xf32>
    %4 = vector.broadcast %3 : vector<1x16xf32> to vector<32x16xf32>
    %5 = arith.mulf %1, %4 : vector<32x16xf32>
    %6 = arith.truncf %5 : vector<32x16xf32> to vector<32x16xbf16>
    %c0_5 = arith.constant 0 : index
    %c0_6 = arith.constant 0 : index
    %c0_7 = arith.constant 0 : index
    %7 = vector.load %arg2[%c0_5, %c0_6, %c0_7] : memref<8x16x16xbf16, #tpu.memory_space<vmem>>, vector<1x16x16xbf16>
    %8 = vector.shape_cast %7 : vector<1x16x16xbf16> to vector<16x16xbf16>
    %cst = arith.constant dense<0.000000e+00> : vector<32x16xf32>
    %9 = tpu.matmul %6, %8, %cst {dimension_numbers = #tpu.dot_dimension_numbers<[1], [0], [0], [1], [0, 0, 1, 1], [], []>} : vector<32x16xbf16>, vector<16x16xbf16>, vector<32x16xf32> -> vector<32x16xf32>
    %c0_8 = arith.constant 0 : index
    %c0_9 = arith.constant 0 : index
    %c0_10 = arith.constant 0 : index
    %10 = vector.load %arg6[%c0_8, %c0_9, %c0_10] : memref<8x1x16xf32, #tpu.memory_space<vmem>>, vector<1x1x16xf32>
    %11 = vector.shape_cast %10 : vector<1x1x16xf32> to vector<1x16xf32>
    %12 = vector.broadcast %11 : vector<1x16xf32> to vector<32x16xf32>
    %13 = arith.mulf %5, %12 : vector<32x16xf32>
    %14 = arith.subf %9, %13 : vector<32x16xf32>
    %c0_11 = arith.constant 0 : index
    %c0_12 = arith.constant 0 : index
    %c0_13 = arith.constant 0 : index
    %15 = vector.load %arg5[%c0_11, %c0_12, %c0_13] : memref<8x1x16xf32, #tpu.memory_space<vmem>>, vector<1x1x16xf32>
    %16 = vector.shape_cast %15 : vector<1x1x16xf32> to vector<1x16xf32>
    %17 = vector.broadcast %16 : vector<1x16xf32> to vector<32x16xf32>
    %18 = arith.mulf %14, %17 : vector<32x16xf32>
    %19 = arith.subf %1, %18 : vector<32x16xf32>
    %20 = math.absf %19 : vector<32x16xf32>
    %cst_14 = arith.constant dense<0.000000e+00> : vector<16xf32>
    %21 = vector.multi_reduction <add>, %20, %cst_14 [0] : vector<32x16xf32> to vector<16xf32>
    %22 = vector.shape_cast %21 : vector<16xf32> to vector<1x16xf32>
    %c0_15 = arith.constant 0 : index
    %c0_16 = arith.constant 0 : index
    %c0_17 = arith.constant 0 : index
    %23 = vector.load %arg7[%c0_15, %c0_16, %c0_17] : memref<1x1x128xf32, #tpu.memory_space<vmem>>, vector<1x1x16xf32>
    %24 = vector.shape_cast %23 : vector<1x1x16xf32> to vector<1x16xf32>
    %25 = vector.shape_cast %22 : vector<1x16xf32> to vector<1x1x16xf32>
    tpu.vector_store %arg7[%c0_15, %c0_16, %c0_17], %25 {strides = array<i32>} : memref<1x1x128xf32, #tpu.memory_space<vmem>>, vector<1x1x16xf32>,
    %c1 = arith.constant 1 : index
    %c0_18 = arith.constant 0 : index
    %c0_19 = arith.constant 0 : index
    %26 = vector.load %arg3[%c1, %c0_18, %c0_19] : memref<8x32x16xf32, #tpu.memory_space<vmem>>, vector<1x32x16xf32>
    %27 = vector.shape_cast %26 : vector<1x32x16xf32> to vector<32x16xf32>
    %c1_20 = arith.constant 1 : index
    %c0_21 = arith.constant 0 : index
    %c0_22 = arith.constant 0 : index
    %28 = vector.load %arg4[%c1_20, %c0_21, %c0_22] : memref<8x1x16xf32, #tpu.memory_space<vmem>>, vector<1x1x16xf32>
    %29 = vector.shape_cast %28 : vector<1x1x16xf32> to vector<1x16xf32>
    %30 = vector.broadcast %29 : vector<1x16xf32> to vector<32x16xf32>
    %31 = arith.mulf %27, %30 : vector<32x16xf32>
    %32 = arith.truncf %31 : vector<32x16xf32> to vector<32x16xbf16>
    %c1_23 = arith.constant 1 : index
    %c0_24 = arith.constant 0 : index
    %c0_25 = arith.constant 0 : index
    %33 = vector.load %arg2[%c1_23, %c0_24, %c0_25] : memref<8x16x16xbf16, #tpu.memory_space<vmem>>, vector<1x16x16xbf16>
    %34 = vector.shape_cast %33 : vector<1x16x16xbf16> to vector<16x16xbf16>
    %cst_26 = arith.constant dense<0.000000e+00> : vector<32x16xf32>
    %35 = tpu.matmul %32, %34, %cst_26 {dimension_numbers = #tpu.dot_dimension_numbers<[1], [0], [0], [1], [0, 0, 1, 1], [], []>} : vector<32x16xbf16>, vector<16x16xbf16>, vector<32x16xf32> -> vector<32x16xf32>
    %c1_27 = arith.constant 1 : index
    %c0_28 = arith.constant 0 : index
    %c0_29 = arith.constant 0 : index
    %36 = vector.load %arg6[%c1_27, %c0_28, %c0_29] : memref<8x1x16xf32, #tpu.memory_space<vmem>>, vector<1x1x16xf32>
    %37 = vector.shape_cast %36 : vector<1x1x16xf32> to vector<1x16xf32>
    %38 = vector.broadcast %37 : vector<1x16xf32> to vector<32x16xf32>
    %39 = arith.mulf %31, %38 : vector<32x16xf32>
    %40 = arith.subf %35, %39 : vector<32x16xf32>
    %c1_30 = arith.constant 1 : index
    %c0_31 = arith.constant 0 : index
    %c0_32 = arith.constant 0 : index
    %41 = vector.load %arg5[%c1_30, %c0_31, %c0_32] : memref<8x1x16xf32, #tpu.memory_space<vmem>>, vector<1x1x16xf32>
    %42 = vector.shape_cast %41 : vector<1x1x16xf32> to vector<1x16xf32>
    %43 = vector.broadcast %42 : vector<1x16xf32> to vector<32x16xf32>
    %44 = arith.mulf %40, %43 : vector<32x16xf32>
    %45 = arith.subf %27, %44 : vector<32x16xf32>
    %46 = math.absf %45 : vector<32x16xf32>
    %cst_33 = arith.constant dense<0.000000e+00> : vector<16xf32>
    %47 = vector.multi_reduction <add>, %46, %cst_33 [0] : vector<32x16xf32> to vector<16xf32>
    %48 = vector.shape_cast %47 : vector<16xf32> to vector<1x16xf32>
    %c0_34 = arith.constant 0 : index
    %c0_35 = arith.constant 0 : index
    %c16 = arith.constant 16 : index
    %49 = vector.load %arg7[%c0_34, %c0_35, %c16] : memref<1x1x128xf32, #tpu.memory_space<vmem>>, vector<1x1x16xf32>
    %50 = vector.shape_cast %49 : vector<1x1x16xf32> to vector<1x16xf32>
    %51 = vector.shape_cast %48 : vector<1x16xf32> to vector<1x1x16xf32>
    tpu.vector_store %arg7[%c0_34, %c0_35, %c16], %51 {strides = array<i32>} : memref<1x1x128xf32, #tpu.memory_space<vmem>>, vector<1x1x16xf32>,
    %c2 = arith.constant 2 : index
    %c0_36 = arith.constant 0 : index
    %c0_37 = arith.constant 0 : index
    %52 = vector.load %arg3[%c2, %c0_36, %c0_37] : memref<8x32x16xf32, #tpu.memory_space<vmem>>, vector<1x32x16xf32>
    %53 = vector.shape_cast %52 : vector<1x32x16xf32> to vector<32x16xf32>
    %c2_38 = arith.constant 2 : index
    %c0_39 = arith.constant 0 : index
    %c0_40 = arith.constant 0 : index
    %54 = vector.load %arg4[%c2_38, %c0_39, %c0_40] : memref<8x1x16xf32, #tpu.memory_space<vmem>>, vector<1x1x16xf32>
    %55 = vector.shape_cast %54 : vector<1x1x16xf32> to vector<1x16xf32>
    %56 = vector.broadcast %55 : vector<1x16xf32> to vector<32x16xf32>
    %57 = arith.mulf %53, %56 : vector<32x16xf32>
    %58 = arith.truncf %57 : vector<32x16xf32> to vector<32x16xbf16>
    %c2_41 = arith.constant 2 : index
    %c0_42 = arith.constant 0 : index
    %c0_43 = arith.constant 0 : index
    %59 = vector.load %arg2[%c2_41, %c0_42, %c0_43] : memref<8x16x16xbf16, #tpu.memory_space<vmem>>, vector<1x16x16xbf16>
    %60 = vector.shape_cast %59 : vector<1x16x16xbf16> to vector<16x16xbf16>
    %cst_44 = arith.constant dense<0.000000e+00> : vector<32x16xf32>
    %61 = tpu.matmul %58, %60, %cst_44 {dimension_numbers = #tpu.dot_dimension_numbers<[1], [0], [0], [1], [0, 0, 1, 1], [], []>} : vector<32x16xbf16>, vector<16x16xbf16>, vector<32x16xf32> -> vector<32x16xf32>
    %c2_45 = arith.constant 2 : index
    %c0_46 = arith.constant 0 : index
    %c0_47 = arith.constant 0 : index
    %62 = vector.load %arg6[%c2_45, %c0_46, %c0_47] : memref<8x1x16xf32, #tpu.memory_space<vmem>>, vector<1x1x16xf32>
    %63 = vector.shape_cast %62 : vector<1x1x16xf32> to vector<1x16xf32>
    %64 = vector.broadcast %63 : vector<1x16xf32> to vector<32x16xf32>
    %65 = arith.mulf %57, %64 : vector<32x16xf32>
    %66 = arith.subf %61, %65 : vector<32x16xf32>
    %c2_48 = arith.constant 2 : index
    %c0_49 = arith.constant 0 : index
    %c0_50 = arith.constant 0 : index
    %67 = vector.load %arg5[%c2_48, %c0_49, %c0_50] : memref<8x1x16xf32, #tpu.memory_space<vmem>>, vector<1x1x16xf32>
    %68 = vector.shape_cast %67 : vector<1x1x16xf32> to vector<1x16xf32>
    %69 = vector.broadcast %68 : vector<1x16xf32> to vector<32x16xf32>
    %70 = arith.mulf %66, %69 : vector<32x16xf32>
    %71 = arith.subf %53, %70 : vector<32x16xf32>
    %72 = math.absf %71 : vector<32x16xf32>
    %cst_51 = arith.constant dense<0.000000e+00> : vector<16xf32>
    %73 = vector.multi_reduction <add>, %72, %cst_51 [0] : vector<32x16xf32> to vector<16xf32>
    %74 = vector.shape_cast %73 : vector<16xf32> to vector<1x16xf32>
    %c0_52 = arith.constant 0 : index
    %c0_53 = arith.constant 0 : index
    %c32 = arith.constant 32 : index
    %75 = vector.load %arg7[%c0_52, %c0_53, %c32] : memref<1x1x128xf32, #tpu.memory_space<vmem>>, vector<1x1x16xf32>
    %76 = vector.shape_cast %75 : vector<1x1x16xf32> to vector<1x16xf32>
    %77 = vector.shape_cast %74 : vector<1x16xf32> to vector<1x1x16xf32>
    tpu.vector_store %arg7[%c0_52, %c0_53, %c32], %77 {strides = array<i32>} : memref<1x1x128xf32, #tpu.memory_space<vmem>>, vector<1x1x16xf32>,
    %c3 = arith.constant 3 : index
    %c0_54 = arith.constant 0 : index
    %c0_55 = arith.constant 0 : index
    %78 = vector.load %arg3[%c3, %c0_54, %c0_55] : memref<8x32x16xf32, #tpu.memory_space<vmem>>, vector<1x32x16xf32>
    %79 = vector.shape_cast %78 : vector<1x32x16xf32> to vector<32x16xf32>
    %c3_56 = arith.constant 3 : index
    %c0_57 = arith.constant 0 : index
    %c0_58 = arith.constant 0 : index
    %80 = vector.load %arg4[%c3_56, %c0_57, %c0_58] : memref<8x1x16xf32, #tpu.memory_space<vmem>>, vector<1x1x16xf32>
    %81 = vector.shape_cast %80 : vector<1x1x16xf32> to vector<1x16xf32>
    %82 = vector.broadcast %81 : vector<1x16xf32> to vector<32x16xf32>
    %83 = arith.mulf %79, %82 : vector<32x16xf32>
    %84 = arith.truncf %83 : vector<32x16xf32> to vector<32x16xbf16>
    %c3_59 = arith.constant 3 : index
    %c0_60 = arith.constant 0 : index
    %c0_61 = arith.constant 0 : index
    %85 = vector.load %arg2[%c3_59, %c0_60, %c0_61] : memref<8x16x16xbf16, #tpu.memory_space<vmem>>, vector<1x16x16xbf16>
    %86 = vector.shape_cast %85 : vector<1x16x16xbf16> to vector<16x16xbf16>
    %cst_62 = arith.constant dense<0.000000e+00> : vector<32x16xf32>
    %87 = tpu.matmul %84, %86, %cst_62 {dimension_numbers = #tpu.dot_dimension_numbers<[1], [0], [0], [1], [0, 0, 1, 1], [], []>} : vector<32x16xbf16>, vector<16x16xbf16>, vector<32x16xf32> -> vector<32x16xf32>
    %c3_63 = arith.constant 3 : index
    %c0_64 = arith.constant 0 : index
    %c0_65 = arith.constant 0 : index
    %88 = vector.load %arg6[%c3_63, %c0_64, %c0_65] : memref<8x1x16xf32, #tpu.memory_space<vmem>>, vector<1x1x16xf32>
    %89 = vector.shape_cast %88 : vector<1x1x16xf32> to vector<1x16xf32>
    %90 = vector.broadcast %89 : vector<1x16xf32> to vector<32x16xf32>
    %91 = arith.mulf %83, %90 : vector<32x16xf32>
    %92 = arith.subf %87, %91 : vector<32x16xf32>
    %c3_66 = arith.constant 3 : index
    %c0_67 = arith.constant 0 : index
    %c0_68 = arith.constant 0 : index
    %93 = vector.load %arg5[%c3_66, %c0_67, %c0_68] : memref<8x1x16xf32, #tpu.memory_space<vmem>>, vector<1x1x16xf32>
    %94 = vector.shape_cast %93 : vector<1x1x16xf32> to vector<1x16xf32>
    %95 = vector.broadcast %94 : vector<1x16xf32> to vector<32x16xf32>
    %96 = arith.mulf %92, %95 : vector<32x16xf32>
    %97 = arith.subf %79, %96 : vector<32x16xf32>
    %98 = math.absf %97 : vector<32x16xf32>
    %cst_69 = arith.constant dense<0.000000e+00> : vector<16xf32>
    %99 = vector.multi_reduction <add>, %98, %cst_69 [0] : vector<32x16xf32> to vector<16xf32>
    %100 = vector.shape_cast %99 : vector<16xf32> to vector<1x16xf32>
    %c0_70 = arith.constant 0 : index
    %c0_71 = arith.constant 0 : index
    %c48 = arith.constant 48 : index
    %101 = vector.load %arg7[%c0_70, %c0_71, %c48] : memref<1x1x128xf32, #tpu.memory_space<vmem>>, vector<1x1x16xf32>
    %102 = vector.shape_cast %101 : vector<1x1x16xf32> to vector<1x16xf32>
    %103 = vector.shape_cast %100 : vector<1x16xf32> to vector<1x1x16xf32>
    tpu.vector_store %arg7[%c0_70, %c0_71, %c48], %103 {strides = array<i32>} : memref<1x1x128xf32, #tpu.memory_space<vmem>>, vector<1x1x16xf32>,
    %c4 = arith.constant 4 : index
    %c0_72 = arith.constant 0 : index
    %c0_73 = arith.constant 0 : index
    %104 = vector.load %arg3[%c4, %c0_72, %c0_73] : memref<8x32x16xf32, #tpu.memory_space<vmem>>, vector<1x32x16xf32>
    %105 = vector.shape_cast %104 : vector<1x32x16xf32> to vector<32x16xf32>
    %c4_74 = arith.constant 4 : index
    %c0_75 = arith.constant 0 : index
    %c0_76 = arith.constant 0 : index
    %106 = vector.load %arg4[%c4_74, %c0_75, %c0_76] : memref<8x1x16xf32, #tpu.memory_space<vmem>>, vector<1x1x16xf32>
    %107 = vector.shape_cast %106 : vector<1x1x16xf32> to vector<1x16xf32>
    %108 = vector.broadcast %107 : vector<1x16xf32> to vector<32x16xf32>
    %109 = arith.mulf %105, %108 : vector<32x16xf32>
    %110 = arith.truncf %109 : vector<32x16xf32> to vector<32x16xbf16>
    %c4_77 = arith.constant 4 : index
    %c0_78 = arith.constant 0 : index
    %c0_79 = arith.constant 0 : index
    %111 = vector.load %arg2[%c4_77, %c0_78, %c0_79] : memref<8x16x16xbf16, #tpu.memory_space<vmem>>, vector<1x16x16xbf16>
    %112 = vector.shape_cast %111 : vector<1x16x16xbf16> to vector<16x16xbf16>
    %cst_80 = arith.constant dense<0.000000e+00> : vector<32x16xf32>
    %113 = tpu.matmul %110, %112, %cst_80 {dimension_numbers = #tpu.dot_dimension_numbers<[1], [0], [0], [1], [0, 0, 1, 1], [], []>} : vector<32x16xbf16>, vector<16x16xbf16>, vector<32x16xf32> -> vector<32x16xf32>
    %c4_81 = arith.constant 4 : index
    %c0_82 = arith.constant 0 : index
    %c0_83 = arith.constant 0 : index
    %114 = vector.load %arg6[%c4_81, %c0_82, %c0_83] : memref<8x1x16xf32, #tpu.memory_space<vmem>>, vector<1x1x16xf32>
    %115 = vector.shape_cast %114 : vector<1x1x16xf32> to vector<1x16xf32>
    %116 = vector.broadcast %115 : vector<1x16xf32> to vector<32x16xf32>
    %117 = arith.mulf %109, %116 : vector<32x16xf32>
    %118 = arith.subf %113, %117 : vector<32x16xf32>
    %c4_84 = arith.constant 4 : index
    %c0_85 = arith.constant 0 : index
    %c0_86 = arith.constant 0 : index
    %119 = vector.load %arg5[%c4_84, %c0_85, %c0_86] : memref<8x1x16xf32, #tpu.memory_space<vmem>>, vector<1x1x16xf32>
    %120 = vector.shape_cast %119 : vector<1x1x16xf32> to vector<1x16xf32>
    %121 = vector.broadcast %120 : vector<1x16xf32> to vector<32x16xf32>
    %122 = arith.mulf %118, %121 : vector<32x16xf32>
    %123 = arith.subf %105, %122 : vector<32x16xf32>
    %124 = math.absf %123 : vector<32x16xf32>
    %cst_87 = arith.constant dense<0.000000e+00> : vector<16xf32>
    %125 = vector.multi_reduction <add>, %124, %cst_87 [0] : vector<32x16xf32> to vector<16xf32>
    %126 = vector.shape_cast %125 : vector<16xf32> to vector<1x16xf32>
    %c0_88 = arith.constant 0 : index
    %c0_89 = arith.constant 0 : index
    %c64 = arith.constant 64 : index
    %127 = vector.load %arg7[%c0_88, %c0_89, %c64] : memref<1x1x128xf32, #tpu.memory_space<vmem>>, vector<1x1x16xf32>
    %128 = vector.shape_cast %127 : vector<1x1x16xf32> to vector<1x16xf32>
    %129 = vector.shape_cast %126 : vector<1x16xf32> to vector<1x1x16xf32>
    tpu.vector_store %arg7[%c0_88, %c0_89, %c64], %129 {strides = array<i32>} : memref<1x1x128xf32, #tpu.memory_space<vmem>>, vector<1x1x16xf32>,
    %c5 = arith.constant 5 : index
    %c0_90 = arith.constant 0 : index
    %c0_91 = arith.constant 0 : index
    %130 = vector.load %arg3[%c5, %c0_90, %c0_91] : memref<8x32x16xf32, #tpu.memory_space<vmem>>, vector<1x32x16xf32>
    %131 = vector.shape_cast %130 : vector<1x32x16xf32> to vector<32x16xf32>
    %c5_92 = arith.constant 5 : index
    %c0_93 = arith.constant 0 : index
    %c0_94 = arith.constant 0 : index
    %132 = vector.load %arg4[%c5_92, %c0_93, %c0_94] : memref<8x1x16xf32, #tpu.memory_space<vmem>>, vector<1x1x16xf32>
    %133 = vector.shape_cast %132 : vector<1x1x16xf32> to vector<1x16xf32>
    %134 = vector.broadcast %133 : vector<1x16xf32> to vector<32x16xf32>
    %135 = arith.mulf %131, %134 : vector<32x16xf32>
    %136 = arith.truncf %135 : vector<32x16xf32> to vector<32x16xbf16>
    %c5_95 = arith.constant 5 : index
    %c0_96 = arith.constant 0 : index
    %c0_97 = arith.constant 0 : index
    %137 = vector.load %arg2[%c5_95, %c0_96, %c0_97] : memref<8x16x16xbf16, #tpu.memory_space<vmem>>, vector<1x16x16xbf16>
    %138 = vector.shape_cast %137 : vector<1x16x16xbf16> to vector<16x16xbf16>
    %cst_98 = arith.constant dense<0.000000e+00> : vector<32x16xf32>
    %139 = tpu.matmul %136, %138, %cst_98 {dimension_numbers = #tpu.dot_dimension_numbers<[1], [0], [0], [1], [0, 0, 1, 1], [], []>} : vector<32x16xbf16>, vector<16x16xbf16>, vector<32x16xf32> -> vector<32x16xf32>
    %c5_99 = arith.constant 5 : index
    %c0_100 = arith.constant 0 : index
    %c0_101 = arith.constant 0 : index
    %140 = vector.load %arg6[%c5_99, %c0_100, %c0_101] : memref<8x1x16xf32, #tpu.memory_space<vmem>>, vector<1x1x16xf32>
    %141 = vector.shape_cast %140 : vector<1x1x16xf32> to vector<1x16xf32>
    %142 = vector.broadcast %141 : vector<1x16xf32> to vector<32x16xf32>
    %143 = arith.mulf %135, %142 : vector<32x16xf32>
    %144 = arith.subf %139, %143 : vector<32x16xf32>
    %c5_102 = arith.constant 5 : index
    %c0_103 = arith.constant 0 : index
    %c0_104 = arith.constant 0 : index
    %145 = vector.load %arg5[%c5_102, %c0_103, %c0_104] : memref<8x1x16xf32, #tpu.memory_space<vmem>>, vector<1x1x16xf32>
    %146 = vector.shape_cast %145 : vector<1x1x16xf32> to vector<1x16xf32>
    %147 = vector.broadcast %146 : vector<1x16xf32> to vector<32x16xf32>
    %148 = arith.mulf %144, %147 : vector<32x16xf32>
    %149 = arith.subf %131, %148 : vector<32x16xf32>
    %150 = math.absf %149 : vector<32x16xf32>
    %cst_105 = arith.constant dense<0.000000e+00> : vector<16xf32>
    %151 = vector.multi_reduction <add>, %150, %cst_105 [0] : vector<32x16xf32> to vector<16xf32>
    %152 = vector.shape_cast %151 : vector<16xf32> to vector<1x16xf32>
    %c0_106 = arith.constant 0 : index
    %c0_107 = arith.constant 0 : index
    %c80 = arith.constant 80 : index
    %153 = vector.load %arg7[%c0_106, %c0_107, %c80] : memref<1x1x128xf32, #tpu.memory_space<vmem>>, vector<1x1x16xf32>
    %154 = vector.shape_cast %153 : vector<1x1x16xf32> to vector<1x16xf32>
    %155 = vector.shape_cast %152 : vector<1x16xf32> to vector<1x1x16xf32>
    tpu.vector_store %arg7[%c0_106, %c0_107, %c80], %155 {strides = array<i32>} : memref<1x1x128xf32, #tpu.memory_space<vmem>>, vector<1x1x16xf32>,
    %c6 = arith.constant 6 : index
    %c0_108 = arith.constant 0 : index
    %c0_109 = arith.constant 0 : index
    %156 = vector.load %arg3[%c6, %c0_108, %c0_109] : memref<8x32x16xf32, #tpu.memory_space<vmem>>, vector<1x32x16xf32>
    %157 = vector.shape_cast %156 : vector<1x32x16xf32> to vector<32x16xf32>
    %c6_110 = arith.constant 6 : index
    %c0_111 = arith.constant 0 : index
    %c0_112 = arith.constant 0 : index
    %158 = vector.load %arg4[%c6_110, %c0_111, %c0_112] : memref<8x1x16xf32, #tpu.memory_space<vmem>>, vector<1x1x16xf32>
    %159 = vector.shape_cast %158 : vector<1x1x16xf32> to vector<1x16xf32>
    %160 = vector.broadcast %159 : vector<1x16xf32> to vector<32x16xf32>
    %161 = arith.mulf %157, %160 : vector<32x16xf32>
    %162 = arith.truncf %161 : vector<32x16xf32> to vector<32x16xbf16>
    %c6_113 = arith.constant 6 : index
    %c0_114 = arith.constant 0 : index
    %c0_115 = arith.constant 0 : index
    %163 = vector.load %arg2[%c6_113, %c0_114, %c0_115] : memref<8x16x16xbf16, #tpu.memory_space<vmem>>, vector<1x16x16xbf16>
    %164 = vector.shape_cast %163 : vector<1x16x16xbf16> to vector<16x16xbf16>
    %cst_116 = arith.constant dense<0.000000e+00> : vector<32x16xf32>
    %165 = tpu.matmul %162, %164, %cst_116 {dimension_numbers = #tpu.dot_dimension_numbers<[1], [0], [0], [1], [0, 0, 1, 1], [], []>} : vector<32x16xbf16>, vector<16x16xbf16>, vector<32x16xf32> -> vector<32x16xf32>
    %c6_117 = arith.constant 6 : index
    %c0_118 = arith.constant 0 : index
    %c0_119 = arith.constant 0 : index
    %166 = vector.load %arg6[%c6_117, %c0_118, %c0_119] : memref<8x1x16xf32, #tpu.memory_space<vmem>>, vector<1x1x16xf32>
    %167 = vector.shape_cast %166 : vector<1x1x16xf32> to vector<1x16xf32>
    %168 = vector.broadcast %167 : vector<1x16xf32> to vector<32x16xf32>
    %169 = arith.mulf %161, %168 : vector<32x16xf32>
    %170 = arith.subf %165, %169 : vector<32x16xf32>
    %c6_120 = arith.constant 6 : index
    %c0_121 = arith.constant 0 : index
    %c0_122 = arith.constant 0 : index
    %171 = vector.load %arg5[%c6_120, %c0_121, %c0_122] : memref<8x1x16xf32, #tpu.memory_space<vmem>>, vector<1x1x16xf32>
    %172 = vector.shape_cast %171 : vector<1x1x16xf32> to vector<1x16xf32>
    %173 = vector.broadcast %172 : vector<1x16xf32> to vector<32x16xf32>
    %174 = arith.mulf %170, %173 : vector<32x16xf32>
    %175 = arith.subf %157, %174 : vector<32x16xf32>
    %176 = math.absf %175 : vector<32x16xf32>
    %cst_123 = arith.constant dense<0.000000e+00> : vector<16xf32>
    %177 = vector.multi_reduction <add>, %176, %cst_123 [0] : vector<32x16xf32> to vector<16xf32>
    %178 = vector.shape_cast %177 : vector<16xf32> to vector<1x16xf32>
    %c0_124 = arith.constant 0 : index
    %c0_125 = arith.constant 0 : index
    %c96 = arith.constant 96 : index
    %179 = vector.load %arg7[%c0_124, %c0_125, %c96] : memref<1x1x128xf32, #tpu.memory_space<vmem>>, vector<1x1x16xf32>
    %180 = vector.shape_cast %179 : vector<1x1x16xf32> to vector<1x16xf32>
    %181 = vector.shape_cast %178 : vector<1x16xf32> to vector<1x1x16xf32>
    tpu.vector_store %arg7[%c0_124, %c0_125, %c96], %181 {strides = array<i32>} : memref<1x1x128xf32, #tpu.memory_space<vmem>>, vector<1x1x16xf32>,
    %c7 = arith.constant 7 : index
    %c0_126 = arith.constant 0 : index
    %c0_127 = arith.constant 0 : index
    %182 = vector.load %arg3[%c7, %c0_126, %c0_127] : memref<8x32x16xf32, #tpu.memory_space<vmem>>, vector<1x32x16xf32>
    %183 = vector.shape_cast %182 : vector<1x32x16xf32> to vector<32x16xf32>
    %c7_128 = arith.constant 7 : index
    %c0_129 = arith.constant 0 : index
    %c0_130 = arith.constant 0 : index
    %184 = vector.load %arg4[%c7_128, %c0_129, %c0_130] : memref<8x1x16xf32, #tpu.memory_space<vmem>>, vector<1x1x16xf32>
    %185 = vector.shape_cast %184 : vector<1x1x16xf32> to vector<1x16xf32>
    %186 = vector.broadcast %185 : vector<1x16xf32> to vector<32x16xf32>
    %187 = arith.mulf %183, %186 : vector<32x16xf32>
    %188 = arith.truncf %187 : vector<32x16xf32> to vector<32x16xbf16>
    %c7_131 = arith.constant 7 : index
    %c0_132 = arith.constant 0 : index
    %c0_133 = arith.constant 0 : index
    %189 = vector.load %arg2[%c7_131, %c0_132, %c0_133] : memref<8x16x16xbf16, #tpu.memory_space<vmem>>, vector<1x16x16xbf16>
    %190 = vector.shape_cast %189 : vector<1x16x16xbf16> to vector<16x16xbf16>
    %cst_134 = arith.constant dense<0.000000e+00> : vector<32x16xf32>
    %191 = tpu.matmul %188, %190, %cst_134 {dimension_numbers = #tpu.dot_dimension_numbers<[1], [0], [0], [1], [0, 0, 1, 1], [], []>} : vector<32x16xbf16>, vector<16x16xbf16>, vector<32x16xf32> -> vector<32x16xf32>
    %c7_135 = arith.constant 7 : index
    %c0_136 = arith.constant 0 : index
    %c0_137 = arith.constant 0 : index
    %192 = vector.load %arg6[%c7_135, %c0_136, %c0_137] : memref<8x1x16xf32, #tpu.memory_space<vmem>>, vector<1x1x16xf32>
    %193 = vector.shape_cast %192 : vector<1x1x16xf32> to vector<1x16xf32>
    %194 = vector.broadcast %193 : vector<1x16xf32> to vector<32x16xf32>
    %195 = arith.mulf %187, %194 : vector<32x16xf32>
    %196 = arith.subf %191, %195 : vector<32x16xf32>
    %c7_138 = arith.constant 7 : index
    %c0_139 = arith.constant 0 : index
    %c0_140 = arith.constant 0 : index
    %197 = vector.load %arg5[%c7_138, %c0_139, %c0_140] : memref<8x1x16xf32, #tpu.memory_space<vmem>>, vector<1x1x16xf32>
    %198 = vector.shape_cast %197 : vector<1x1x16xf32> to vector<1x16xf32>
    %199 = vector.broadcast %198 : vector<1x16xf32> to vector<32x16xf32>
    %200 = arith.mulf %196, %199 : vector<32x16xf32>
    %201 = arith.subf %183, %200 : vector<32x16xf32>
    %202 = math.absf %201 : vector<32x16xf32>
    %cst_141 = arith.constant dense<0.000000e+00> : vector<16xf32>
    %203 = vector.multi_reduction <add>, %202, %cst_141 [0] : vector<32x16xf32> to vector<16xf32>
    %204 = vector.shape_cast %203 : vector<16xf32> to vector<1x16xf32>
    %c0_142 = arith.constant 0 : index
    %c0_143 = arith.constant 0 : index
    %c112 = arith.constant 112 : index
    %205 = vector.load %arg7[%c0_142, %c0_143, %c112] : memref<1x1x128xf32, #tpu.memory_space<vmem>>, vector<1x1x16xf32>
    %206 = vector.shape_cast %205 : vector<1x1x16xf32> to vector<1x16xf32>
    %207 = vector.shape_cast %204 : vector<1x16xf32> to vector<1x1x16xf32>
    tpu.vector_store %arg7[%c0_142, %c0_143, %c112], %207 {strides = array<i32>} : memref<1x1x128xf32, #tpu.memory_space<vmem>>, vector<1x1x16xf32>,
    return
  }
  func.func @transform_0(%arg0: i32, %arg1: i32) -> (i32, i32, i32) {
    %c0_i32 = arith.constant 0 : i32
    %c0_i32_0 = arith.constant 0 : i32
    return %arg0, %c0_i32, %arg1 : i32, i32, i32
  }
  func.func @transform_1(%arg0: i32, %arg1: i32) -> (i32, i32, i32) {
    %c0_i32 = arith.constant 0 : i32
    %c0_i32_0 = arith.constant 0 : i32
    %c0_i32_1 = arith.constant 0 : i32
    return %arg0, %c0_i32, %c0_i32_0 : i32, i32, i32
  }
  func.func @transform_2(%arg0: i32, %arg1: i32) -> (i32, i32, i32) {
    %c0_i32 = arith.constant 0 : i32
    %c0_i32_0 = arith.constant 0 : i32
    %c0_i32_1 = arith.constant 0 : i32
    return %arg0, %c0_i32, %c0_i32_0 : i32, i32, i32
  }
  func.func @transform_3(%arg0: i32, %arg1: i32) -> (i32, i32, i32) {
    %c0_i32 = arith.constant 0 : i32
    %c0_i32_0 = arith.constant 0 : i32
    return %arg0, %c0_i32, %arg1 : i32, i32, i32
  }
  func.func @transform_4(%arg0: i32, %arg1: i32) -> (i32, i32, i32) {
    %c0_i32 = arith.constant 0 : i32
    %c0_i32_0 = arith.constant 0 : i32
    return %arg0, %c0_i32, %arg1 : i32, i32, i32
  }
  func.func @transform_5(%arg0: i32, %arg1: i32) -> (i32, i32, i32) {
    %c0_i32 = arith.constant 0 : i32
    %c0_i32_0 = arith.constant 0 : i32
    return %arg0, %c0_i32, %arg1 : i32, i32, i32
  }
}

</mosaic_0001>

<bundles_post_ra>
// kernel: node_info_score.1
= control target key start
LH: loop header
LB: loop body
LE: loop exit
PB: predicated region body
PF: predicated region fallthrough
CT: control target
= control target key end

     0   :  { %vm46_vm0 = vcmask 130048   ;;  %vm149_vm1 = vcmask 122880   ;;  %s1319_s15 = smov 16   ;;  %s1320_s16 = smov 48   ;;  %vm287_vm2 = vcmask 254080   ;;  %vm425_vm3 = vcmask 385280   ;;  %s1975_s0 = inlined_call_operand.vmem [shape: bf16[8,16,16], index: 0, kind: input, shape index: {}]   ;;  %s1976_s1 = inlined_call_operand.vmem [shape: f32[8,32,16], index: 1, kind: input, shape index: {}]   ;;  %s1977_s2 = inlined_call_operand.vmem [shape: f32[8,1,16], index: 2, kind: input, shape index: {}]   ;;  %s1978_s4 = inlined_call_operand.vmem [shape: f32[8,1,16], index: 4, kind: input, shape index: {}]   ;;  %s1979_s3 = inlined_call_operand.vmem [shape: f32[8,1,16], index: 3, kind: input, shape index: {}]   ;;  %s1980_s5 = inlined_call_operand.vmem [shape: f32[1,1,128], index: 5, kind: output, shape index: {}]  }
   0x1   :  { %v1311_v0 = vld [vmem:[%s1975_s0] sm:$0xff]   ;;  %v1312_v1 = vld [vmem:[%s1975_s0 + $0x8] sm:$0xff]   ;;  %v1403_v12 = vld [vmem:[%s1976_s1 + $0x10] sm:$0xff]  ;;  %s1321_s17 = smov 32   ;;  %s1322_s18 = smov 64   ;;  %vm563_vm4 = vcmask 516480  }
   0x2   :  { %1256 = vmatprep.subr.bf16.mxu0 %v1311_v0  ;;  %v1365_v2 = vld [vmem:[%s1976_s1] sm:$0xff]  ;;  %v1370_v3 = vld [vmem:[%s1976_s1 + $0x8] sm:$0xff]  ;;  %1262 = vmatprep.subr.bf16.mxu1 %v1312_v1  ;;  %v1408_v13 = vld [vmem:[%s1976_s1 + $0x18] sm:$0xff]  ;;  %s1323_s19 = smov 80   ;;  %s1324_s20 = smov 96   ;;  %vm701_vm5 = vcmask 647680  }
   0x3   :  { %v1121_v4 = vld [vmem:[%s1977_s2] ss:$0 sm:$0xff]  ;;  %1257 = vmatpush3.bf16.msra.mxu0 %v1311_v0  ;;  %v1389_v8 = vld [vmem:[%s1976_s1 + $0x28] sm:$0xff]  ;;  %v1132_v9 = vld [vmem:[%s1977_s2 + $0x1] ss:$0 sm:$0xff]  ;;  %1263 = vmatpush3.bf16.msra.mxu1 %v1312_v1  ;;  %s1325_s21 = smov 112  }
   0x4   :  { %v1376_v5 = vmul.f32 %v1121_v4, %v1365_v2  ;;  %v1379_v6 = vmul.f32 %v1121_v4, %v1370_v3  ;;  %v1384_v7 = vld [vmem:[%s1976_s1 + $0x20] sm:$0xff]  ;;  %v1398_v11 = vmul.f32 %v1132_v9, %v1389_v8  ;;  %v1413_v14 = vld [vmem:[%s1976_s1 + $0x30] sm:$0xff]  ;;  %v1418_v16 = vmul.f32 %v1121_v4, %v1403_v12  ;;  %v1426_v18 = vld [vmem:[%s1976_s1 + $0x38] sm:$0xff] }
   0x5   :  { %v1395_v10 = vmul.f32 %v1132_v9, %v1384_v7  ;;  %v1421_v17 = vmul.f32 %v1121_v4, %v1408_v13  ;;  %v1429_v19 = vmul.f32 %v1132_v9, %v1413_v14  ;;  %v1434_v21 = vmul.f32 %v1132_v9, %v1426_v18  ;;  %v1313_v22 = vld [vmem:[%s1975_s0 + $0x10] sm:$0xff]   ;;  %v1314_v24 = vld [vmem:[%s1975_s0 + $0x18] sm:$0xff]   ;;  %v1448_v25 = vld [vmem:[%s1976_s1 + $0x40] sm:$0xff] }
   0x6   :  { %v36_v15 = vpack.c.bf16 %v1379_v6, %v1376_v5  ;;  %v1453_v26 = vld [vmem:[%s1976_s1 + $0x48] sm:$0xff]  ;;  %1268 = vmatprep.subr.bf16.mxu0 %v1313_v22  ;;  %v1147_v28 = vld [vmem:[%s1977_s2 + $0x2] ss:$0 sm:$0xff]  ;;  %1274 = vmatprep.subr.bf16.mxu1 %v1314_v24  ;;  %v1162_v33 = vld [vmem:[%s1977_s2 + $0x3] ss:$0 sm:$0xff]  ;;  %vm839_vm6 = vcmask 778880  }
   0x7   :  { %v168_v20 = vpack.c.bf16 %v1398_v11, %v1395_v10  ;;  %v37_v23 = vpack.c.bf16 %v1421_v17, %v1418_v16  ;;  %v169_v27 = vpack.c.bf16 %v1434_v21, %v1429_v19  ;;  %v1464_v29 = vld [vmem:[%s1976_s1 + $0x60] sm:$0xff]  ;;  %v1469_v30 = vld [vmem:[%s1976_s1 + $0x68] sm:$0xff]  ;;  %v1473_v31 = vmul.f32 %v1147_v28, %v1448_v25  ;;  %v1484_v34 = vld [vmem:[%s1976_s1 + $0x50] sm:$0xff] }
   0x8   :  { %1258 = vmatprep.mubr.msk.bf16.mxu0 %vm46_vm0, %v36_v15  ;;  %1998 = vst [vmem:[#allocation2_spill] sm:$0xff] %v1469_v30  ;;  %v1476_v32 = vmul.f32 %v1147_v28, %v1453_v26  ;;  %v1489_v35 = vld [vmem:[%s1976_s1 + $0x58] sm:$0xff]  ;;  %v1493_v36 = vmul.f32 %v1162_v33, %v1464_v29  ;;  %v1496_v37 = vmul.f32 %v1162_v33, %v1469_v30  ;;  %v1504_v39 = vld [vmem:[%s1976_s1 + $0x70] sm:$0xff]  ;;  %v1315_v45 = vld [vmem:[%s1975_s0 + $0x20] sm:$0xff]   ;;  %vm977_vm7 = vcmask 910080  }
   0x9   :  { %1264 = vmatprep.mubr.msk.bf16.mxu1 %vm46_vm0, %v168_v20  ;;  %1259 = vmatmul.mubr.msk.bf16.vlgmr.msra.gmra.mxu0 %vm46_vm0, %v37_v23  ;;  %v1499_v38 = vmul.f32 %v1147_v28, %v1484_v34  ;;  %v1509_v40 = vld [vmem:[%s1976_s1 + $0x78] sm:$0xff]  ;;  %v1514_v42 = vmul.f32 %v1147_v28, %v1489_v35  ;;  %v1517_v43 = vmul.f32 %v1162_v33, %v1504_v39  ;;  %v1316_v47 = vld [vmem:[%s1975_s0 + $0x28] sm:$0xff]   ;;  %v1533_v48 = vld [vmem:[%s1976_s1 + $0x80] sm:$0xff]  ;;  %vm1115_vm8 = vcmask 1041280  }
   0xa   :  { %1265 = vmatmul.mubr.msk.bf16.vlgmr.msra.gmra.mxu1 %vm46_vm0, %v169_v27  ;;  %1269 = vmatpush3.bf16.msra.mxu0 %v1313_v22  ;;  %v306_v41 = vpack.c.bf16 %v1476_v32, %v1473_v31  ;;  %v1520_v44 = vmul.f32 %v1162_v33, %v1509_v40  ;;  %v444_v46 = vpack.c.bf16 %v1496_v37, %v1493_v36  ;;  %v1541_v50 = vld [vmem:[%s1976_s1 + $0x88] sm:$0xff]  ;;  %v1177_v51 = vld [vmem:[%s1977_s2 + $0x4] ss:$0 sm:$0xff]  ;;  %v1192_v57 = vld [vmem:[%s1977_s2 + $0x5] ss:$0 sm:$0xff] }
   0xb   :  { %1275 = vmatpush3.bf16.msra.mxu1 %v1314_v24  ;;  %1999 = vst [vmem:[#allocation3_spill] sm:$0xff] %v1533_v48  ;;  %v307_v49 = vpack.c.bf16 %v1514_v42, %v1499_v38  ;;  %1280 = vmatprep.subr.bf16.mxu0 %v1315_v45  ;;  %2000 = vst [vmem:[#allocation4_spill] sm:$0xff] %v1541_v50  ;;  %v1549_v52 = vld [vmem:[%s1976_s1 + $0xa0] sm:$0xff]  ;;  %v1555_v54 = vmul.f32 %v1177_v51, %v1533_v48  ;;  %v1563_v56 = vld [vmem:[%s1976_s1 + $0xa8] sm:$0xff] }
   0xc   :  { %1270 = vmatprep.mubr.msk.bf16.mxu0 %vm46_vm0, %v306_v41  ;;  %2001 = vst [vmem:[#allocation5_spill] sm:$0xff] %v1549_v52  ;;  %1276 = vmatprep.mubr.msk.bf16.mxu1 %vm46_vm0, %v444_v46  ;;  %v445_v53 = vpack.c.bf16 %v1520_v44, %v1517_v43  ;;  %v1558_v55 = vmul.f32 %v1177_v51, %v1541_v50  ;;  %2002 = vst [vmem:[#allocation6_spill] sm:$0xff] %v1563_v56  ;;  %v1571_v58 = vld [vmem:[%s1976_s1 + $0x90] sm:$0xff]  ;;  %v1582_v61 = vld [vmem:[%s1976_s1 + $0x98] sm:$0xff] }
   0xd   :  { %1286 = vmatprep.subr.bf16.mxu1 %v1316_v47  ;;  %2003 = vst [vmem:[#allocation7_spill] sm:$0xff] %v1571_v58  ;;  %v1574_v59 = vmul.f32 %v1192_v57, %v1549_v52  ;;  %v1577_v60 = vmul.f32 %v1192_v57, %v1563_v56  ;;  %2004 = vst [vmem:[#allocation8_spill] sm:$0xff] %v1582_v61  ;;  %v1587_v62 = vld [vmem:[%s1976_s1 + $0xb0] sm:$0xff]  ;;  %v1592_v63 = vld [vmem:[%s1976_s1 + $0xb8] sm:$0xff]  ;;  %v1603_v9 = vmul.f32 %v1177_v51, %v1571_v58 }
   0xe   :  { %2005 = vst [vmem:[#allocation9_spill] sm:$0xff] %v1587_v62  ;;  %2006 = vst [vmem:[#allocation10_spill] sm:$0xff] %v1592_v63  ;;  %v582_v0 = vpack.c.bf16 %v1558_v55, %v1555_v54  ;;  %v1317_v1 = vld [vmem:[%s1975_s0 + $0x30] sm:$0xff]   ;;  %v1606_v15 = vmul.f32 %v1177_v51, %v1582_v61  ;;  %v1318_v20 = vld [vmem:[%s1975_s0 + $0x38] sm:$0xff]   ;;  %v1613_v22 = vmul.f32 %v1192_v57, %v1587_v62 }
   0xf   :  { %v720_v4 = vpack.c.bf16 %v1577_v60, %v1574_v59  ;;  %v1616_v23 = vmul.f32 %v1192_v57, %v1592_v63  ;;  %v1621_v24 = vld [vmem:[%s1976_s1 + $0xc0] sm:$0xff]  ;;  %v1626_v27 = vld [vmem:[%s1976_s1 + $0xc8] sm:$0xff] }
  0x10   :  { %2007 = vst [vmem:[#allocation11_spill] sm:$0xff] %v1621_v24  ;;  %2008 = vst [vmem:[#allocation12_spill] sm:$0xff] %v1626_v27  ;;  %v1207_v28 = vld [vmem:[%s1977_s2 + $0x6] ss:$0 sm:$0xff]  ;;  %v1646_v46 = vld [vmem:[%s1976_s1 + $0xe8] sm:$0xff] }
  0x11   :  { %1271 = vmatmul.mubr.msk.bf16.vlgmr.msra.gmra.mxu0 %vm46_vm0, %v307_v49  ;;  %v1633_v33 = vmul.f32 %v1207_v28, %v1621_v24  ;;  %v1636_v41 = vmul.f32 %v1207_v28, %v1626_v27  ;;  %2010 = vst [vmem:[#allocation14_spill] sm:$0xff] %v1646_v46  ;;  %v721_v57 = vpack.c.bf16 %v1616_v23, %v1613_v22  ;;  %v1677_v27 = vld [vmem:[%s1976_s1 + $0xf0] sm:$0xff] }
  0x12   :  { %1277 = vmatmul.mubr.msk.bf16.vlgmr.msra.gmra.mxu1 %vm46_vm0, %v445_v53  ;;  %1281 = vmatpush3.bf16.msra.mxu0 %v1315_v45  ;;  %v1641_v45 = vld [vmem:[%s1976_s1 + $0xe0] sm:$0xff]  ;;  %v583_v53 = vpack.c.bf16 %v1606_v15, %v1603_v9  ;;  %2013 = vst [vmem:[#allocation17_spill] sm:$0xff] %v1677_v27 }
  0x13   :  { %1287 = vmatpush3.bf16.msra.mxu1 %v1316_v47  ;;  %1282 = vmatprep.mubr.msk.bf16.mxu0 %vm46_vm0, %v582_v0  ;;  %2009 = vst [vmem:[#allocation13_spill] sm:$0xff] %v1641_v45  ;;  %v1222_v47 = vld [vmem:[%s1977_s2 + $0x7] ss:$0 sm:$0xff]  ;;  %v1665_v0 = vld [vmem:[%s1976_s1 + $0xd0] sm:$0xff] }
  0x14   :  { %1288 = vmatprep.mubr.msk.bf16.mxu1 %vm46_vm0, %v720_v4  ;;  %1292 = vmatprep.subr.bf16.mxu0 %v1317_v1  ;;  %v1653_v49 = vmul.f32 %v1222_v47, %v1641_v45  ;;  %v1656_v51 = vmul.f32 %v1222_v47, %v1646_v46  ;;  %2011 = vst [vmem:[#allocation15_spill] sm:$0xff] %v1665_v0  ;;  %v1670_v4 = vld [vmem:[%s1976_s1 + $0xd8] sm:$0xff] }
  0x15   :  { %1298 = vmatprep.subr.bf16.mxu1 %v1318_v20  ;;  %2012 = vst [vmem:[#allocation16_spill] sm:$0xff] %v1670_v4  ;;  %v858_v46 = vpack.c.bf16 %v1636_v41, %v1633_v33  ;;  %v1682_v45 = vld [vmem:[%s1976_s1 + $0xf8] sm:$0xff]  ;;  %v856_v56 = vmul.f32 %v1207_v28, %v1665_v0  ;;  %v1689_v50 = vmul.f32 %v1207_v28, %v1670_v4  ;;  %v1169_v28 = vld [vmem:[%s1978_s4 + $0x3] ss:$0 sm:$0xff] }
  0x16   :  { %2014 = vst [vmem:[#allocation18_spill] sm:$0xff] %v1682_v45  ;;  %v996_v24 = vpack.c.bf16 %v1656_v51, %v1653_v49  ;;  %v994_v63 = vmul.f32 %v1222_v47, %v1677_v27  ;;  %v1694_v61 = vmul.f32 %v1222_v47, %v1682_v45  ;;  %v1184_v27 = vld [vmem:[%s1978_s4 + $0x4] ss:$0 sm:$0xff] }
  0x17   :  { %v1787_v62 = vmul.f32 %v1184_v27, %v1558_v55 }
  0x18   :  { %v997_v0 = vpack.c.bf16 %v1694_v61, %v994_v63 }
  0x19   :  { %1283 = vmatmul.mubr.msk.bf16.vlgmr.msra.gmra.mxu0 %vm46_vm0, %v583_v53  ;;  %v859_v53 = vpack.c.bf16 %v1689_v50, %v856_v56 }
  0x1a   :  { %1289 = vmatmul.mubr.msk.bf16.vlgmr.msra.gmra.mxu1 %vm46_vm0, %v721_v57  ;;  %1293 = vmatpush3.bf16.msra.mxu0 %v1317_v1  ;;  %v1125_v1 = vld [vmem:[%s1978_s4] ss:$0 sm:$0xff] }
  0x1b   :  { %1299 = vmatpush3.bf16.msra.mxu1 %v1318_v20  ;;  %1294 = vmatprep.mubr.msk.bf16.mxu0 %vm46_vm0, %v858_v46  ;;  %v1139_v20 = vld [vmem:[%s1978_s4 + $0x1] ss:$0 sm:$0xff]  ;;  %v111_v46 = vmul.f32 %v1125_v1, %v1418_v16  ;;  %v109_v57 = vmul.f32 %v1125_v1, %v1376_v5  ;;  %v1721_v4 = vmul.f32 %v1125_v1, %v1379_v6  ;;  %v1199_v16 = vld [vmem:[%s1978_s4 + $0x5] ss:$0 sm:$0xff] }
  0x1c   :  { %1300 = vmatprep.mubr.msk.bf16.mxu1 %vm46_vm0, %v996_v24  ;;  %v1154_v24 = vld [vmem:[%s1978_s4 + $0x2] ss:$0 sm:$0xff]  ;;  %v244_v47 = vmul.f32 %v1139_v20, %v1429_v19  ;;  %v245_v45 = vmul.f32 %v1139_v20, %v1434_v21  ;;  %v1730_v19 = vmul.f32 %v1139_v20, %v1398_v11 }
  0x1d   :  { %v1733_v5 = vmul.f32 %v1154_v24, %v1499_v38  ;;  %v1739_v6 = vmul.f32 %v1154_v24, %v1473_v31  ;;  %v1745_v21 = vmul.f32 %v1154_v24, %v1514_v42  ;;  %v1751_v11 = vmul.f32 %v1154_v24, %v1476_v32  ;;  %v1214_v38 = vld [vmem:[%s1978_s4 + $0x6] ss:$0 sm:$0xff]  ;;  %v1126_v31 = vld [vmem:[%s1979_s3] ss:$0 sm:$0xff] }
  0x1e   :  { %v1763_v42 = vmul.f32 %v1184_v27, %v1603_v9  ;;  %v1769_v32 = vmul.f32 %v1184_v27, %v1555_v54  ;;  %v1781_v9 = vmul.f32 %v1184_v27, %v1606_v15  ;;  %v1797_v15 = vmul.f32 %v1214_v38, %v1633_v33 }
  0x1f   :  { %v1803_v55 = vmul.f32 %v1214_v38, %v1689_v50 }
  0x21   :  { %1295 = vmatmul.mubr.msk.bf16.vlgmr.msra.gmra.mxu0 %vm46_vm0, %v859_v53  ;;  %v112_v53 = vmul.f32 %v1125_v1, %v1421_v17  ;;  %v1742_v17 = vmul.f32 %v1169_v28, %v1493_v36  ;;  %v1748_v1 = vmul.f32 %v1169_v28, %v1520_v44  ;;  %v1760_v36 = vmul.f32 %v1169_v28, %v1496_v37  ;;  %v1141_v37 = vld [vmem:[%s1979_s3 + $0x1] ss:$0 sm:$0xff] }
  0x22   :  { %1301 = vmatmul.mubr.msk.bf16.vlgmr.msra.gmra.mxu1 %vm46_vm0, %v997_v0  ;;  %v242_v0 = vmul.f32 %v1139_v20, %v1395_v10  ;;  %v1736_v10 = vmul.f32 %v1169_v28, %v1517_v43  ;;  %v1766_v44 = vmul.f32 %v1199_v16, %v1613_v22  ;;  %v1229_v20 = vld [vmem:[%s1978_s4 + $0x7] ss:$0 sm:$0xff]  ;;  %v1778_v28 = vmul.f32 %v1199_v16, %v1574_v59 }
  0x23   :  { %v1784_v22 = vmul.f32 %v1199_v16, %v1616_v23 }
  0x24   :  { %2015 = vst [vmem:[#allocation19_spill] sm:$0xff] %v1778_v28  ;;  %v1794_v28 = vmul.f32 %v1229_v20, %v994_v63  ;;  %v1807_v63 = vmul.f32 %v1229_v20, %v1694_v61 }
  0x25   :  { %2016 = vst [vmem:[#allocation20_spill] sm:$0xff] %v1784_v22 }
  0xc9   :  { %v1260_v43 = vpop.f32.mrf.mxu0 }
  0xca   :  { %v115_v24 = vsub.f32 %v1260_v43, %v111_v46  ;;  %v1266_v52 = vpop.f32.mrf.mxu1  ;;  %v1790_v46 = vmul.f32 %v1199_v16, %v1577_v60  ;;  %v1792_v43 = vmul.f32 %v1214_v38, %v856_v56 }
  0xcb   :  { %v248_v54 = vsub.f32 %v1266_v52, %v244_v47  ;;  %v87_v48 = vpop.f32.mrf.mxu0  ;;  %v1800_v47 = vmul.f32 %v1229_v20, %v1653_v49 }
  0xcc   :  { %v126_v58 = vmul.f32 %v1126_v31, %v115_v24  ;;  %v113_v30 = vsub.f32 %v87_v48, %v109_v57  ;;  %v219_v59 = vpop.f32.mrf.mxu1  ;;  %v1811_v24 = vmul.f32 %v1214_v38, %v1636_v41  ;;  %v1819_v38 = vmul.f32 %v1229_v20, %v1656_v51  ;;  %v1171_v20 = vld [vmem:[%s1979_s3 + $0x3] ss:$0 sm:$0xff] }
  0xcd   :  { %v260_v23 = vmul.f32 %v1141_v37, %v248_v54  ;;  %v246_v22 = vsub.f32 %v219_v59, %v242_v0  ;;  %v1261_v52 = vpop.f32.mrf.mxu0 }
  0xce   :  { %v130_v56 = vsub.f32 %v1403_v12, %v126_v58  ;;  %v124_v60 = vmul.f32 %v1126_v31, %v113_v30  ;;  %v116_v27 = vsub.f32 %v1261_v52, %v112_v53  ;;  %v1267_v48 = vpop.f32.mrf.mxu1 }
  0xcf   :  { %v264_v33 = vsub.f32 %v1413_v14, %v260_v23  ;;  %v258_v57 = vmul.f32 %v1141_v37, %v246_v22  ;;  %v249_v16 = vsub.f32 %v1267_v48, %v245_v45  ;;  %v90_v0 = vpop.f32.mrf.mxu0 }
  0xd0   :  { %v134_v49 = vand.u32 2147483647, %v130_v56  ;;  %v128_v50 = vsub.f32 %v1365_v2, %v124_v60  ;;  %v127_v54 = vmul.f32 %v1126_v31, %v116_v27  ;;  %v114_v12 = vsub.f32 %v90_v0, %v1721_v4  ;;  %v222_v30 = vpop.f32.mrf.mxu1 }
  0xd1   :  { %v268_v58 = vand.u32 2147483647, %v264_v33  ;;  %v262_v53 = vsub.f32 %v1384_v7, %v258_v57  ;;  %v261_v61 = vmul.f32 %v1141_v37, %v249_v16  ;;  %v247_v59 = vsub.f32 %v222_v30, %v1730_v19  ;;  %v1272_v14 = vpop.f32.mrf.mxu0  ;;  %v1156_v7 = vld [vmem:[%s1979_s3 + $0x2] ss:$0 sm:$0xff] }
  0xd2   :  { %v132_v22 = vand.u32 2147483647, %v128_v50  ;;  %v131_v45 = vsub.f32 %v1408_v13, %v127_v54  ;;  %v125_v23 = vmul.f32 %v1126_v31, %v114_v12  ;;  %v1278_v41 = vpop.f32.mrf.mxu1  ;;  %v139_v2 = vsel %vm46_vm0, %v134_v49, 0.0 }
  0xd3   :  { %v266_v52 = vand.u32 2147483647, %v262_v53  ;;  %v265_v4 = vsub.f32 %v1426_v18, %v261_v61  ;;  %v259_v56 = vmul.f32 %v1141_v37, %v247_v59  ;;  %v357_v19 = vpop.f32.mrf.mxu0  ;;  %v1827_v60 = vsel %vm46_vm0, %v268_v58, 0.0 }
  0xd4   :  { %v135_v13 = vand.u32 2147483647, %v131_v45  ;;  %v129_v31 = vsub.f32 %v1370_v3, %v125_v23  ;;  %v386_v51 = vsub.f32 %v1272_v14, %v1733_v5  ;;  %v495_v27 = vpop.f32.mrf.mxu1  ;;  %v136_v18 = vsel %vm46_vm0, %v132_v22, 0.0 }
  0xd5   :  { %v270_v37 = vsel %vm46_vm0, %v266_v52, 0.0  ;;  %v263_v48 = vsub.f32 %v1389_v8, %v259_v56  ;;  %v524_v33 = vsub.f32 %v1278_v41, %v1736_v10  ;;  %v1273_v57 = vpop.f32.mrf.mxu0  ;;  %v269_v16 = vand.u32 2147483647, %v265_v4 }
  0xd6   :  { %v133_v0 = vand.u32 2147483647, %v129_v31  ;;  %v398_v49 = vmul.f32 %v1156_v7, %v386_v51  ;;  %v384_v3 = vsub.f32 %v357_v19, %v1739_v6  ;;  %v1279_v5 = vpop.f32.mrf.mxu1  ;;  %v141_v50 = vsel %vm46_vm0, %v135_v13, 0.0 }
  0xd7   :  { %v267_v54 = vand.u32 2147483647, %v263_v48  ;;  %v536_v12 = vmul.f32 %v1171_v20, %v524_v33  ;;  %v522_v30 = vsub.f32 %v495_v27, %v1742_v17  ;;  %v360_v58 = vpop.f32.mrf.mxu0  ;;  %v387_v10 = vsub.f32 %v1273_v57, %v1745_v21 }
  0xd8   :  { %v137_v53 = vsel %vm46_vm0, %v133_v0, 0.0  ;;  %v402_v8 = vsub.f32 %v1484_v34, %v398_v49  ;;  %v396_v61 = vmul.f32 %v1156_v7, %v384_v3  ;;  %v498_v59 = vpop.f32.mrf.mxu1  ;;  %v1847_v41 = vsel %vm46_vm0, %v269_v16, 0.0 }
  0xd9   :  { %v138_v14 = vadd.f32 %v137_v53, %v136_v18  ;;  %v271_v22 = vsel %vm46_vm0, %v267_v54, 0.0  ;;  %v540_v6 = vsub.f32 %v1504_v39, %v536_v12  ;;  %v534_v45 = vmul.f32 %v1171_v20, %v522_v30  ;;  %v1284_v23 = vpop.f32.mrf.mxu0  ;;  %v1201_v54 = vld [vmem:[%s1979_s3 + $0x5] ss:$0 sm:$0xff] }
  0xda   :  { %v406_v17 = vand.u32 2147483647, %v402_v8  ;;  %v400_v52 = vsub.f32 %v1448_v25, %v396_v61  ;;  %v399_v4 = vmul.f32 %v1156_v7, %v387_v10  ;;  %v1290_v56 = vpop.f32.mrf.mxu1  ;;  %v525_v13 = vsub.f32 %v1279_v5, %v1748_v1 }
  0xdb   :  { %v140_v34 = vadd.f32 %v139_v2, %v138_v14  ;;  %v544_v19 = vand.u32 2147483647, %v540_v6  ;;  %v538_v21 = vsub.f32 %v1464_v29, %v534_v45  ;;  %v633_v31 = vpop.f32.mrf.mxu0  ;;  %v1852_v51 = vadd.f32 %v271_v22, %v270_v37  ;;  %v2018_v6 = vld [vmem:[#allocation19_spill] sm:$0xff] }
  0xdc   :  { %v404_v39 = vand.u32 2147483647, %v400_v52  ;;  %v403_v27 = vsub.f32 %v1489_v35, %v399_v4  ;;  %v385_v18 = vsub.f32 %v360_v58, %v1751_v11  ;;  %v771_v48 = vpop.f32.mrf.mxu1  ;;  %v411_v25 = vsel %vm46_vm0, %v406_v17, 0.0  ;;  %v1186_v35 = vld [vmem:[%s1979_s3 + $0x4] ss:$0 sm:$0xff] }
  0xdd   :  { %v142_v33 = vadd.f32 %v141_v50, %v140_v34  ;;  %v542_v57 = vand.u32 2147483647, %v538_v21  ;;  %v537_v16 = vmul.f32 %v1171_v20, %v525_v13  ;;  %v1285_v2 = vpop.f32.mrf.mxu0  ;;  %v1858_v0 = vsel %vm46_vm0, %v544_v19, 0.0  ;;  %v2020_v34 = vld [vmem:[#allocation9_spill] sm:$0xff] }
  0xde   :  { %v407_v29 = vand.u32 2147483647, %v403_v27  ;;  %v397_v1 = vmul.f32 %v1156_v7, %v385_v18  ;;  %v523_v37 = vsub.f32 %v498_v59, %v1760_v36  ;;  %v1291_v49 = vpop.f32.mrf.mxu1  ;;  %v408_v3 = vsel %vm46_vm0, %v404_v39, 0.0  ;;  %v2017_v59 = vld [vmem:[#allocation2_spill] sm:$0xff] }
  0xdf   :  { %v143_v11 = vrot.slane %v142_v33, 4  ;;  %v541_v5 = vsub.f32 %v1509_v40, %v537_v16  ;;  %v662_v50 = vsub.f32 %v1284_v23, %v1763_v42  ;;  %v636_v12 = vpop.f32.mrf.mxu0  ;;  %v546_v7 = vsel %vm46_vm0, %v542_v57, 0.0  ;;  %v2022_v57 = vld [vmem:[#allocation5_spill] sm:$0xff] }
  0xe0   :  { %v401_v36 = vsub.f32 %v1453_v26, %v397_v1  ;;  %v535_v30 = vmul.f32 %v1171_v20, %v523_v37  ;;  %v800_v58 = vsub.f32 %v1290_v56, %v1766_v44  ;;  %v1876_v8 = vsel %vm46_vm0, %v407_v29, 0.0  ;;  %v774_v61 = vpop.f32.mrf.mxu1  ;;  %v2019_v26 = vld [vmem:[#allocation7_spill] sm:$0xff]  ;;  %v2023_v29 = vld [vmem:[#allocation20_spill] sm:$0xff] }
  0xe1   :  { %v1873_v53 = vadd.f32 %v143_v11, %v142_v33  ;;  %v674_v40 = vmul.f32 %v1186_v35, %v662_v50  ;;  %v660_v42 = vsub.f32 %v633_v31, %v1769_v32  ;;  %v798_v45 = vsub.f32 %v771_v48, %v2018_v6  ;;  %v1296_v52 = vpop.f32.mrf.mxu0  ;;  %v2021_v31 = vld [vmem:[#allocation3_spill] sm:$0xff]  ;;  %v2025_v6 = vld [vmem:[#allocation10_spill] sm:$0xff] }
  0xe2   :  { %v405_v10 = vand.u32 2147483647, %v401_v36  ;;  %v539_v14 = vsub.f32 %v2017_v59, %v535_v30  ;;  %v812_v22 = vmul.f32 %v1201_v54, %v800_v58  ;;  %v545_v23 = vand.u32 2147483647, %v541_v5  ;;  %v1302_v18 = vpop.f32.mrf.mxu1  ;;  %v2024_v36 = vld [vmem:[#allocation8_spill] sm:$0xff] }
  0xe3   :  { %v678_v20 = vsub.f32 %v2019_v26, %v674_v40  ;;  %v672_v17 = vmul.f32 %v1186_v35, %v660_v42  ;;  %v663_v44 = vsub.f32 %v1285_v2, %v1781_v9  ;;  %v810_v32 = vmul.f32 %v1201_v54, %v798_v45  ;;  %v1216_v40 = vld [vmem:[%s1979_s3 + $0x6] ss:$0 sm:$0xff] }
  0xe4   :  { %v409_v4 = vsel %vm46_vm0, %v405_v10, 0.0  ;;  %v543_v56 = vand.u32 2147483647, %v539_v14  ;;  %v816_v19 = vsub.f32 %v2020_v34, %v812_v22  ;;  %v801_v9 = vsub.f32 %v1291_v49, %v2023_v29  ;;  %v1231_v10 = vld [vmem:[%s1979_s3 + $0x7] ss:$0 sm:$0xff]  ;;  %v1047_v59 = vpop.f32.mrf.mxu1 }
  0xe5   :  { %v410_v21 = vadd.f32 %v409_v4, %v408_v3  ;;  %v682_v13 = vand.u32 2147483647, %v678_v20  ;;  %v676_v39 = vsub.f32 %v2021_v31, %v672_v17  ;;  %v675_v27 = vmul.f32 %v1186_v35, %v663_v44  ;;  %v909_v3 = vpop.f32.mrf.mxu0 }
  0xe6   :  { %v547_v48 = vsel %vm46_vm0, %v543_v56, 0.0  ;;  %v820_v33 = vand.u32 2147483647, %v816_v19  ;;  %v814_v16 = vsub.f32 %v2022_v57, %v810_v32  ;;  %v1890_v2 = vsel %vm46_vm0, %v545_v23, 0.0  ;;  %v2027_v56 = vld [vmem:[#allocation6_spill] sm:$0xff]  ;;  %v2028_v19 = vld [vmem:[#allocation15_spill] sm:$0xff] }
  0xe7   :  { %v1892_v1 = vadd.f32 %v411_v25, %v410_v21  ;;  %v1894_v37 = vadd.f32 %v547_v48, %v546_v7  ;;  %v680_v11 = vand.u32 2147483647, %v676_v39  ;;  %v687_v5 = vsel %vm46_vm0, %v682_v13, 0.0  ;;  %v2030_v48 = vld [vmem:[#allocation11_spill] sm:$0xff]  ;;  %v2031_v57 = vld [vmem:[#allocation13_spill] sm:$0xff] }
  0xe8   :  { %v818_v50 = vand.u32 2147483647, %v814_v16  ;;  %v679_v30 = vsub.f32 %v2024_v36, %v675_v27  ;;  %v813_v58 = vmul.f32 %v1201_v54, %v801_v9  ;;  %v825_v49 = vsel %vm46_vm0, %v820_v33, 0.0 }
  0xe9   :  { %v661_v42 = vsub.f32 %v636_v12, %v1787_v62  ;;  %v799_v25 = vsub.f32 %v774_v61, %v1790_v46  ;;  %v938_v7 = vsub.f32 %v1296_v52, %v1792_v43  ;;  %v684_v14 = vsel %vm46_vm0, %v680_v11, 0.0  ;;  %v1297_v46 = vpop.f32.mrf.mxu0  ;;  %v2026_v52 = vld [vmem:[#allocation4_spill] sm:$0xff] }
  0xea   :  { %v683_v22 = vand.u32 2147483647, %v679_v30  ;;  %v817_v45 = vsub.f32 %v2025_v6, %v813_v58  ;;  %v1076_v23 = vsub.f32 %v1302_v18, %v1794_v28  ;;  %v936_v62 = vsub.f32 %v909_v3, %v1797_v15  ;;  %v1303_v28 = vpop.f32.mrf.mxu1 }
  0xeb   :  { %v673_v26 = vmul.f32 %v1186_v35, %v661_v42  ;;  %v811_v20 = vmul.f32 %v1201_v54, %v799_v25  ;;  %v950_v17 = vmul.f32 %v1216_v40, %v938_v7  ;;  %v822_v43 = vsel %vm46_vm0, %v818_v50, 0.0  ;;  %v2029_v54 = vld [vmem:[#allocation17_spill] sm:$0xff]  ;;  %v912_v11 = vpop.f32.mrf.mxu0 }
  0xec   :  { %v821_v12 = vand.u32 2147483647, %v817_v45  ;;  %v1088_v61 = vmul.f32 %v1231_v10, %v1076_v23  ;;  %v1074_v44 = vsub.f32 %v1047_v59, %v1800_v47  ;;  %v948_v21 = vmul.f32 %v1216_v40, %v936_v62 }
  0xed   :  { %v677_v4 = vsub.f32 %v2026_v52, %v673_v26  ;;  %v815_v34 = vsub.f32 %v2027_v56, %v811_v20  ;;  %v954_v32 = vsub.f32 %v2028_v19, %v950_v17  ;;  %v689_v35 = vsel %vm46_vm0, %v683_v22, 0.0  ;;  %v2032_v22 = vld [vmem:[#allocation16_spill] sm:$0xff] }
  0xee   :  { %v1092_v13 = vsub.f32 %v2029_v54, %v1088_v61  ;;  %v1086_v15 = vmul.f32 %v1231_v10, %v1074_v44  ;;  %v939_v31 = vsub.f32 %v1297_v46, %v1803_v55  ;;  %v952_v47 = vsub.f32 %v2030_v48, %v948_v21  ;;  %v1050_v55 = vpop.f32.mrf.mxu1  ;;  %v2033_v46 = vld [vmem:[#allocation18_spill] sm:$0xff] }
  0xef   :  { %v681_v39 = vand.u32 2147483647, %v677_v4  ;;  %v819_v27 = vand.u32 2147483647, %v815_v34  ;;  %v958_v18 = vand.u32 2147483647, %v954_v32  ;;  %v1077_v9 = vsub.f32 %v1303_v28, %v1807_v63 }
  0xf0   :  { %v1096_v33 = vand.u32 2147483647, %v1092_v13  ;;  %v1090_v16 = vsub.f32 %v2031_v57, %v1086_v15  ;;  %v951_v29 = vmul.f32 %v1216_v40, %v939_v31  ;;  %v827_v3 = vsel %vm46_vm0, %v821_v12, 0.0 }
  0xf1   :  { %v685_v50 = vsel %vm46_vm0, %v681_v39, 0.0  ;;  %v823_v36 = vsel %vm46_vm0, %v819_v27, 0.0  ;;  %v956_v30 = vand.u32 2147483647, %v952_v47  ;;  %v963_v25 = vsel %vm46_vm0, %v958_v18, 0.0 }
  0xf2   :  { %v686_v58 = vadd.f32 %v685_v50, %v684_v14  ;;  %v824_v42 = vadd.f32 %v823_v36, %v822_v43  ;;  %v1101_v7 = vsel %vm46_vm0, %v1096_v33, 0.0  ;;  %v1094_v59 = vand.u32 2147483647, %v1090_v16 }
  0xf3   :  { %v955_v6 = vsub.f32 %v2032_v22, %v951_v29  ;;  %v1089_v45 = vmul.f32 %v1231_v10, %v1077_v9  ;;  %v937_v63 = vsub.f32 %v912_v11, %v1811_v24  ;;  %v960_v20 = vsel %vm46_vm0, %v956_v30, 0.0 }
  0xf4   :  { %v688_v23 = vadd.f32 %v687_v5, %v686_v58  ;;  %v826_v26 = vadd.f32 %v825_v49, %v824_v42  ;;  %v1075_v17 = vsub.f32 %v1050_v55, %v1819_v38  ;;  %v274_v12 = vadd.f32 %v1827_v60, %v1852_v51  ;;  %v2034_v38 = vld [vmem:[#allocation12_spill] sm:$0xff] }
  0xf5   :  { %v959_v62 = vand.u32 2147483647, %v955_v6  ;;  %v1093_v14 = vsub.f32 %v2033_v46, %v1089_v45  ;;  %v949_v43 = vmul.f32 %v1216_v40, %v937_v63  ;;  %v550_v44 = vadd.f32 %v1858_v0, %v1894_v37  ;;  %v2035_v40 = vld [vmem:[#allocation14_spill] sm:$0xff] }
  0xf6   :  { %v1087_v61 = vmul.f32 %v1231_v10, %v1075_v17  ;;  %v414_v24 = vadd.f32 %v1876_v8, %v1892_v1  ;;  %v690_v5 = vadd.f32 %v689_v35, %v688_v23  ;;  %v1098_v49 = vsel %vm46_vm0, %v1094_v59, 0.0 }
  0xf7   :  { %v965_v52 = vsel %vm46_vm0, %v959_v62, 0.0  ;;  %v953_v4 = vsub.f32 %v2034_v38, %v949_v43  ;;  %v276_v56 = vadd.f32 %v1847_v41, %v274_v12  ;;  %v552_v60 = vadd.f32 %v1890_v2, %v550_v44 }
  0xf8   :  { %v1091_v34 = vsub.f32 %v2035_v40, %v1087_v61  ;;  %v415_v51 = vrot.slane %v414_v24, 4  ;;  %v691_v10 = vrot.slane %v690_v5, 4  ;;  %v1097_v19 = vand.u32 2147483647, %v1093_v14 }
  0xf9   :  { %v957_v0 = vand.u32 2147483647, %v953_v4  ;;  %v277_v37 = vrot.slane %v276_v56, 4  ;;  %v828_v32 = vadd.f32 %v827_v3, %v826_v26  ;;  %v553_v1 = vrot.slane %v552_v60, 4 }
  0xfa   :  { %v1095_v8 = vand.u32 2147483647, %v1091_v34  ;;  %v416_v21 = vadd.f32 %v415_v51, %v414_v24  ;;  %v692_v28 = vadd.f32 %v691_v10, %v690_v5  ;;  %v145_v41 = vrot.slane %v1873_v53, 2 }
  0xfb   :  { %v961_v35 = vsel %vm46_vm0, %v957_v0, 0.0  ;;  %v278_v54 = vadd.f32 %v277_v37, %v276_v56  ;;  %v829_v13 = vrot.slane %v828_v32, 4  ;;  %v554_v31 = vadd.f32 %v553_v1, %v552_v60 }
  0xfc   :  { %v962_v15 = vadd.f32 %v961_v35, %v960_v20  ;;  %v1099_v2 = vsel %vm46_vm0, %v1095_v8, 0.0  ;;  %v417_v39 = vrot.slane %v416_v21, 2  ;;  %v693_v48 = vrot.slane %v692_v28, 2 }
  0xfd   :  { %v1100_v27 = vadd.f32 %v1099_v2, %v1098_v49  ;;  %v279_v18 = vrot.slane %v278_v54, 2  ;;  %v830_v47 = vadd.f32 %v829_v13, %v828_v32  ;;  %v555_v57 = vrot.slane %v554_v31, 2 }
  0xfe   :  { %v964_v33 = vadd.f32 %v963_v25, %v962_v15  ;;  %v418_v16 = vadd.f32 %v417_v39, %v416_v21  ;;  %v146_v29 = vadd.f32 %v145_v41, %v1873_v53  ;;  %v694_v3 = vadd.f32 %v693_v48, %v692_v28 }
  0xff   :  { %v1102_v9 = vadd.f32 %v1101_v7, %v1100_v27  ;;  %v280_v11 = vadd.f32 %v279_v18, %v278_v54  ;;  %v831_v50 = vrot.slane %v830_v47, 2  ;;  %v1103_v36 = vsel %vm46_vm0, %v1097_v19, 0.0 }
 0x100   :  { %v556_v30 = vadd.f32 %v555_v57, %v554_v31  ;;  %v966_v55 = vadd.f32 %v965_v52, %v964_v33  ;;  %v147_v58 = vrot.slane %v146_v29, 1  ;;  %v419_v59 = vrot.slane %v418_v16, 1 }
 0x101   :  { %v281_v42 = vrot.slane %v280_v11, 1  ;;  %v832_v22 = vadd.f32 %v831_v50, %v830_v47  ;;  %v1104_v6 = vadd.f32 %v1103_v36, %v1102_v9  ;;  %v695_v63 = vrot.slane %v694_v3, 1 }
 0x102   :  { %v557_v45 = vrot.slane %v556_v30, 1  ;;  %v967_v25 = vrot.slane %v966_v55, 4  ;;  %v148_v23 = vadd.f32 %v147_v58, %v146_v29  ;;  %v420_v17 = vadd.f32 %v419_v59, %v418_v16 }
 0x103   :  { %v282_v26 = vadd.f32 %v281_v42, %v280_v11  ;;  %v1105_v20 = vrot.slane %v1104_v6, 4  ;;  %v833_v62 = vrot.slane %v832_v22, 1  ;;  %v696_v14 = vadd.f32 %v695_v63, %v694_v3 }
 0x104   :  { %v558_v53 = vadd.f32 %v557_v45, %v556_v30  ;;  %v968_v7 = vadd.f32 %v967_v25, %v966_v55  ;;  %150 = vst.msk [vmem:[%s1980_s5] sm:$0x1] %vm149_vm1, %v148_v23 }
 0x105   :  { %284 = vrot.lane.b32.xlu0 %v282_v26, %s1319_s15  ;;  %v1106_v46 = vadd.f32 %v1105_v20, %v1104_v6  ;;  %v834_v44 = vadd.f32 %v833_v62, %v832_v22 }
 0x106   :  { %560 = vrot.lane.b32.xlu1 %v558_v53, %s1320_s16  ;;  %v969_v43 = vrot.slane %v968_v7, 2 }
 0x107   :  { %v1107_v12 = vrot.slane %v1106_v46, 2 }
 0x108   :  { %v970_v61 = vadd.f32 %v969_v43, %v968_v7 }
 0x109   :  { %422 = vrot.lane.b32.xlu0 %v420_v17, %s1321_s17  ;;  %v1108_v24 = vadd.f32 %v1107_v12, %v1106_v46 }
 0x10a   :  { %698 = vrot.lane.b32.xlu1 %v696_v14, %s1322_s18  ;;  %v971_v5 = vrot.slane %v970_v61, 1 }
 0x10b   :  { %v1109_v49 = vrot.slane %v1108_v24, 1 }
 0x10c   :  { %v972_v52 = vadd.f32 %v971_v5, %v970_v61 }
 0x10d   :  { %836 = vrot.lane.b32.xlu0 %v834_v44, %s1323_s19  ;;  %v1110_v38 = vadd.f32 %v1109_v49, %v1108_v24 }
 0x10e   :  { %974 = vrot.lane.b32.xlu1 %v972_v52, %s1324_s20 }
 0x111   :  { %1112 = vrot.lane.b32.xlu0 %v1110_v38, %s1325_s21 }
 0x177   :  { %v285_v4 = vpop.permute.xlu0 %284 }
 0x178   :  { %288 = vst.msk [vmem:[%s1980_s5] sm:$0x1] %vm287_vm2, %v285_v4  ;;  %v561_v56 = vpop.permute.xlu1 %560 }
 0x17b   :  { %v423_v40 = vpop.permute.xlu0 %422 }
 0x17c   :  { %426 = vst.msk [vmem:[%s1980_s5] sm:$0x1] %vm425_vm3, %v423_v40  ;;  %v699_v34 = vpop.permute.xlu1 %698 }
 0x17d   :  { %564 = vst.msk [vmem:[%s1980_s5] sm:$0x1] %vm563_vm4, %v561_v56 }
 0x17e   :  { %702 = vst.msk [vmem:[%s1980_s5] sm:$0x1] %vm701_vm5, %v699_v34 }
 0x17f   :  { %v837_v60 = vpop.permute.xlu0 %836 }
 0x180   :  { %840 = vst.msk [vmem:[%s1980_s5] sm:$0x1] %vm839_vm6, %v837_v60  ;;  %v975_v51 = vpop.permute.xlu1 %974 }
 0x181   :  { %978 = vst.msk [vmem:[%s1980_s5] sm:$0x1] %vm977_vm7, %v975_v51 }
 0x183   :  { %v1113_v10 = vpop.permute.xlu0 %1112 }
 0x184   :  { %1116 = vst.msk [vmem:[%s1980_s5] sm:$0x1] %vm1115_vm8, %v1113_v10 }

</bundles_post_ra>
